<compile_context>
chip_gen: v6e
topology: v6e:2x2x1
jax: 0.10.0
libtpu: 0.0.40
codegen_flags: <defaults>
</compile_context>

<pallas_src>
import jax
import jax.numpy as jnp
from jax.experimental import pallas as pl
from jax.experimental.pallas import tpu as pltpu


# ----------------------------- Pallas kernel --------------------------------

def _fused_mlp_conv_kernel(x_ref, w1_ref, b1_ref, w2_ref, b2_ref,
                           w3_ref, bc_ref, o_ref):
    """Single-shot fused forward, all 2-D MXU matmuls, no reshapes/broadcasts.

    x_ref : (M, W)        M = N*C*H (NCHW row-major flatten, free in wrapper)
    w1    : (W, P)        Linear(20,30) weight^T        b1: (1, P)
    w2    : (P, Q)        Linear(30,40) weight^T        b2: (1, Q)
    w3    : (E*H, C*H)    kron(conv_weight, I_H)        bc: (E*H, 1)
    o_ref : (N, E*H, Q)   rows ordered (e, h)  ->  NCHW after a free reshape
    """
    n_batch = o_ref.shape[0]          # static Python int (N)
    ch = w3_ref.shape[1]              # C*H

    x = x_ref[...]                                                     # (M, W)

    # Stage 1: Linear(20,30) + tanh  -- one 2-D matmul over all M rows.
    h = jnp.dot(x, w1_ref[...], preferred_element_type=jnp.float32)
    h = jnp.tanh(h + b1_ref[...])                                      # (M, P)

    # Stage 2: Linear(30,40).
    y = jnp.dot(h, w2_ref[...], preferred_element_type=jnp.float32)
    y = y + b2_ref[...]                                                # (M, Q)

    # Stage 3: 1x1 conv as a block matmul per batch element n (N is tiny &
    # static).  y rows for batch n are contiguous and 8-sublane aligned.
    w3 = w3_ref[...]
    bc = bc_ref[...]
    for n in range(n_batch):
        y_n = y[n * ch:(n + 1) * ch, :]                                # (C*H, Q)
        z_n = jnp.dot(w3, y_n, preferred_element_type=jnp.float32)     # (E*H, Q)
        o_ref[n] = jnp.tanh(z_n + bc).astype(o_ref.dtype)


# ------------------------------ model forward -------------------------------

@jax.jit
def model_tanh_forward(x, w1, b1, w2, b2, wct, bc):
    N, C, H, W = x.shape
    P = w1.shape[1]
    Q = w2.shape[1]
    E = wct.shape[0]
    M = N * C * H

    # Free reshape (W is innermost in NCHW) -- no XLA transpose.
    x2 = x.reshape(M, W)

    # 1x1-conv weight as a block matrix so the kernel emits NCHW row order
    # directly: kron(Wc, I_H)[e*H+h, c*H+h'] = Wc[e,c] * delta(h,h').
    w3 = jnp.kron(wct, jnp.eye(H, dtype=wct.dtype))        # (E*H, C*H)
    bc_rows = jnp.repeat(bc, H).reshape(E * H, 1)          # bias per (e,h) row

    flops = 2 * (M * W * P + M * P * Q + N * (E * H) * (C * H) * Q)
    transcendentals = M * P + N * E * H * Q
    bytes_accessed = 4 * (M * W + W * P + P + P * Q + Q
                          + E * H * C * H + E * H + N * E * H * Q)

    vmem_spec = pl.BlockSpec(memory_space=pltpu.MemorySpace.VMEM)

    zb = pl.pallas_call(
        _fused_mlp_conv_kernel,
        out_shape=jax.ShapeDtypeStruct((N, E * H, Q), x.dtype),
        in_specs=[vmem_spec] * 7,
        out_specs=vmem_spec,
        cost_estimate=pl.CostEstimate(flops=flops,
                                      transcendentals=transcendentals,
                                      bytes_accessed=bytes_accessed),
    )(x2, w1, b1.reshape(1, P), w2, b2.reshape(1, Q), w3, bc_rows)

    # (N, E*H, Q) is already NCHW row order -> free reshape, no transpose.
    return zb.reshape(N, E, H, Q)


# ---------------------------- parameter init --------------------------------

def init_params(key):
    """PyTorch-default-style init (uniform +-1/sqrt(fan_in)).
    Linear weights stored pre-transposed as (in, out); conv weight as (out, in)."""
    ks = jax.random.split(key, 6)

    def u(k, shape, fan_in):
        bound = 1.0 / (fan_in ** 0.5)
        return jax.random.uniform(k, shape, jnp.float32, -bound, bound)

    w1 = u(ks[0], (20, 30), 20)    # Linear(20, 30) weight^T
    b1 = u(ks[1], (30,), 20)       # Linear(20, 30) bias
    w2 = u(ks[2], (30, 40), 30)    # Linear(30, 40) weight^T
    b2 = u(ks[3], (40,), 30)       # Linear(30, 40) bias
    wct = u(ks[4], (40, 20), 20)   # Conv2d(20, 40, 1x1) weight (out, in)
    bc = u(ks[5], (40,), 20)       # Conv2d bias
    return w1, b1, w2, b2, wct, bc


def reference(x, w1, b1, w2, b2, wct, bc):
    y = jnp.tanh(jnp.einsum("nchw,wp->nchp", x, w1) + b1)
    y = jnp.einsum("nchp,pq->nchq", y, w2) + b2
    z = jnp.einsum("nchq,ec->nehq", y, wct) + bc[None, :, None, None]
    return jnp.tanh(z)


# ----------------------------------- main ------------------------------------

if __name__ == "__main__":
    key = jax.random.PRNGKey(0)
    kx, kp = jax.random.split(key)
    # N=2 batch, C=20 channels (Conv2d in_channels), H=4, W=20 (Linear in_features)
    x = jax.random.normal(kx, (2, 20, 4, 20), dtype=jnp.float32)
    params = init_params(kp)

    out = jax.block_until_ready(model_tanh_forward(x, *params))

    assert out.shape == (2, 40, 4, 40), out.shape
    ref = reference(x, *params)
    err = float(jnp.max(jnp.abs(out - ref)))
    assert jnp.allclose(out, ref, atol=1e-2, rtol=1e-2), err
    print("KERNEL_OK")
</pallas_src>

<mosaic_0001>
module attributes {stable_mosaic.version = 11 : i64} {
  func.func @_fused_mlp_conv_kernel(%arg0: memref<160x20xf32, #tpu.memory_space<vmem>>, %arg1: memref<20x30xf32, #tpu.memory_space<vmem>>, %arg2: memref<1x30xf32, #tpu.memory_space<vmem>>, %arg3: memref<30x40xf32, #tpu.memory_space<vmem>>, %arg4: memref<1x40xf32, #tpu.memory_space<vmem>>, %arg5: memref<160x80xf32, #tpu.memory_space<vmem>>, %arg6: memref<160x1xf32, #tpu.memory_space<vmem>>, %arg7: memref<2x160x40xf32, #tpu.memory_space<vmem>>) attributes {dimension_semantics = [], scalar_prefetch = 0 : i64, scratch_operands = 0 : i64, tpu.core_type = #tpu.core_type<tc>} {
    %c0 = arith.constant 0 : index
    %c0_0 = arith.constant 0 : index
    %0 = vector.load %arg0[%c0, %c0_0] : memref<160x20xf32, #tpu.memory_space<vmem>>, vector<160x20xf32>
    %c0_1 = arith.constant 0 : index
    %c0_2 = arith.constant 0 : index
    %1 = vector.load %arg1[%c0_1, %c0_2] : memref<20x30xf32, #tpu.memory_space<vmem>>, vector<20x30xf32>
    %cst = arith.constant dense<0.000000e+00> : vector<160x30xf32>
    %2 = tpu.matmul %0, %1, %cst {dimension_numbers = #tpu.dot_dimension_numbers<[1], [0], [0], [1], [0, 0, 1, 1], [], []>} : vector<160x20xf32>, vector<20x30xf32>, vector<160x30xf32> -> vector<160x30xf32>
    %c0_3 = arith.constant 0 : index
    %c0_4 = arith.constant 0 : index
    %3 = vector.load %arg2[%c0_3, %c0_4] : memref<1x30xf32, #tpu.memory_space<vmem>>, vector<1x30xf32>
    %4 = vector.broadcast %3 : vector<1x30xf32> to vector<160x30xf32>
    %5 = arith.addf %2, %4 : vector<160x30xf32>
    %6 = math.tanh %5 : vector<160x30xf32>
    %c0_5 = arith.constant 0 : index
    %c0_6 = arith.constant 0 : index
    %7 = vector.load %arg3[%c0_5, %c0_6] : memref<30x40xf32, #tpu.memory_space<vmem>>, vector<30x40xf32>
    %cst_7 = arith.constant dense<0.000000e+00> : vector<160x40xf32>
    %8 = tpu.matmul %6, %7, %cst_7 {dimension_numbers = #tpu.dot_dimension_numbers<[1], [0], [0], [1], [0, 0, 1, 1], [], []>} : vector<160x30xf32>, vector<30x40xf32>, vector<160x40xf32> -> vector<160x40xf32>
    %c0_8 = arith.constant 0 : index
    %c0_9 = arith.constant 0 : index
    %9 = vector.load %arg4[%c0_8, %c0_9] : memref<1x40xf32, #tpu.memory_space<vmem>>, vector<1x40xf32>
    %10 = vector.broadcast %9 : vector<1x40xf32> to vector<160x40xf32>
    %11 = arith.addf %8, %10 : vector<160x40xf32>
    %c0_10 = arith.constant 0 : index
    %c0_11 = arith.constant 0 : index
    %12 = vector.load %arg5[%c0_10, %c0_11] : memref<160x80xf32, #tpu.memory_space<vmem>>, vector<160x80xf32>
    %c0_12 = arith.constant 0 : index
    %c0_13 = arith.constant 0 : index
    %13 = vector.load %arg6[%c0_12, %c0_13] : memref<160x1xf32, #tpu.memory_space<vmem>>, vector<160x1xf32>
    %14 = vector.extract_strided_slice %11 {offsets = [0, 0], sizes = [80, 40], strides = [1, 1]} : vector<160x40xf32> to vector<80x40xf32>
    %cst_14 = arith.constant dense<0.000000e+00> : vector<160x40xf32>
    %15 = tpu.matmul %12, %14, %cst_14 {dimension_numbers = #tpu.dot_dimension_numbers<[1], [0], [0], [1], [0, 0, 1, 1], [], []>} : vector<160x80xf32>, vector<80x40xf32>, vector<160x40xf32> -> vector<160x40xf32>
    %16 = vector.broadcast %13 : vector<160x1xf32> to vector<160x40xf32>
    %17 = arith.addf %15, %16 : vector<160x40xf32>
    %18 = math.tanh %17 : vector<160x40xf32>
    %c0_15 = arith.constant 0 : index
    %c0_16 = arith.constant 0 : index
    %c0_17 = arith.constant 0 : index
    %19 = vector.load %arg7[%c0_15, %c0_16, %c0_17] : memref<2x160x40xf32, #tpu.memory_space<vmem>>, vector<1x160x40xf32>
    %20 = vector.shape_cast %19 : vector<1x160x40xf32> to vector<160x40xf32>
    %21 = vector.shape_cast %18 : vector<160x40xf32> to vector<1x160x40xf32>
    tpu.vector_store %arg7[%c0_15, %c0_16, %c0_17], %21 {strides = array<i32>} : memref<2x160x40xf32, #tpu.memory_space<vmem>>, vector<1x160x40xf32>,
    %22 = vector.extract_strided_slice %11 {offsets = [80, 0], sizes = [80, 40], strides = [1, 1]} : vector<160x40xf32> to vector<80x40xf32>
    %cst_18 = arith.constant dense<0.000000e+00> : vector<160x40xf32>
    %23 = tpu.matmul %12, %22, %cst_18 {dimension_numbers = #tpu.dot_dimension_numbers<[1], [0], [0], [1], [0, 0, 1, 1], [], []>} : vector<160x80xf32>, vector<80x40xf32>, vector<160x40xf32> -> vector<160x40xf32>
    %24 = vector.broadcast %13 : vector<160x1xf32> to vector<160x40xf32>
    %25 = arith.addf %23, %24 : vector<160x40xf32>
    %26 = math.tanh %25 : vector<160x40xf32>
    %c1 = arith.constant 1 : index
    %c0_19 = arith.constant 0 : index
    %c0_20 = arith.constant 0 : index
    %27 = vector.load %arg7[%c1, %c0_19, %c0_20] : memref<2x160x40xf32, #tpu.memory_space<vmem>>, vector<1x160x40xf32>
    %28 = vector.shape_cast %27 : vector<1x160x40xf32> to vector<160x40xf32>
    %29 = vector.shape_cast %26 : vector<160x40xf32> to vector<1x160x40xf32>
    tpu.vector_store %arg7[%c1, %c0_19, %c0_20], %29 {strides = array<i32>} : memref<2x160x40xf32, #tpu.memory_space<vmem>>, vector<1x160x40xf32>,
    return
  }
}

</mosaic_0001>

<bundles_post_ra>
// kernel: model_tanh_forward.1
= control target key start
LH: loop header
LB: loop body
LE: loop exit
PB: predicated region body
PF: predicated region fallthrough
CT: control target
= control target key end

     0   :  { %vm118_vm0 = vcmask 1043456   ;;  %vm57_vm1 = vcmask 162816   ;;  %s2186_s0 = inlined_call_operand.vmem [shape: f32[160,20], index: 0, kind: input, shape index: {}]   ;;  %s2187_s1 = inlined_call_operand.vmem [shape: f32[20,30], index: 1, kind: input, shape index: {}]   ;;  %s2188_s2 = inlined_call_operand.vmem [shape: f32[1,30], index: 2, kind: input, shape index: {}]   ;;  %s2189_s3 = inlined_call_operand.vmem [shape: f32[30,40], index: 3, kind: input, shape index: {}]   ;;  %s2190_s4 = inlined_call_operand.vmem [shape: f32[1,40], index: 4, kind: input, shape index: {}]   ;;  %s2191_s5 = inlined_call_operand.vmem [shape: f32[160,80], index: 5, kind: input, shape index: {}]   ;;  %s2192_s6 = inlined_call_operand.vmem [shape: f32[160,1], index: 6, kind: input, shape index: {}]   ;;  %s2193_s7 = inlined_call_operand.hbm [shape: f32[2,160,40], index: 7, kind: output, shape index: {}]  }
   0x1   :  { %v49_v0 = vld [vmem:[%s2187_s1 + $0x10] sm:$0xf]  ;;  %v48_v1 = vld [vmem:[%s2187_s1 + $0x8] sm:$0xff]  ;;  %v27_v2 = vld [vmem:[%s2186_s0] sm:$0xff] }
   0x2   :  { %1368 = vmatprep.subr.msk.mxu0 %vm118_vm0, %v49_v0  ;;  %v47_v3 = vld [vmem:[%s2187_s1] sm:$0xff]  ;;  %1374 = vmatprep.mubr.msk.f32.mxu0 %vm57_vm1, %v27_v2  ;;  %v28_v4 = vld [vmem:[%s2186_s0 + $0x8] sm:$0xff]  ;;  %v29_v5 = vld [vmem:[%s2186_s0 + $0x10] sm:$0xff] }
   0x3   :  { %1369 = vmatpush3.msk.msra.mxu0 %vm118_vm0, %v49_v0 }
   0x4   :  { %1370 = vmatprep.subr.mxu0 %v48_v1 }
   0x5   :  { %1371 = vmatpush3.msra.mxu0 %v48_v1 }
   0x6   :  { %1372 = vmatprep.subr.mxu0 %v47_v3 }
   0x7   :  { %1373 = vmatpush3.msra.mxu0 %v47_v3 }
   0x8   :  { %1375 = vmatmul.mubr.msk.f32.vlgmr.msra.gmra.mxu0 %vm57_vm1, %v28_v4 }
   0x9   :  { %12 = vsyncpa [#allocation3], 0  ;;  %1377 = vmatprep.mubr.msk.f32.mxu0 %vm57_vm1, %v29_v5  ;;  %v30_v6 = vld [vmem:[%s2186_s0 + $0x18] sm:$0xff]  ;;  %v31_v7 = vld [vmem:[%s2186_s0 + $0x20] sm:$0xff]  ;;  %vm379_vm2 = vcmask 1045504   ;;  %vm318_vm3 = vcmask 244736  }
   0xa   :  { %v32_v8 = vld [vmem:[%s2186_s0 + $0x28] sm:$0xff]  ;;  %v33_v9 = vld [vmem:[%s2186_s0 + $0x30] sm:$0xff]  ;;  %v34_v10 = vld [vmem:[%s2186_s0 + $0x38] sm:$0xff]  ;;  %vm688_vm4 = vcmask 654336   ;;  %vm934_vm5 = vcmask 326656  }
   0xb   :  { %v35_v11 = vld [vmem:[%s2186_s0 + $0x40] sm:$0xff]  ;;  %v36_v12 = vld [vmem:[%s2186_s0 + $0x48] sm:$0xff]  ;;  %v37_v13 = vld [vmem:[%s2186_s0 + $0x50] sm:$0xff] }
   0xc   :  { %1378 = vmatmul.mubr.msk.f32.gmra.mxu0 %vm57_vm1, %v30_v6  ;;  %v38_v14 = vld [vmem:[%s2186_s0 + $0x58] sm:$0xff]  ;;  %v39_v15 = vld [vmem:[%s2186_s0 + $0x60] sm:$0xff]  ;;  %v40_v16 = vld [vmem:[%s2186_s0 + $0x68] sm:$0xff] }
   0xd   :  { %1380 = vmatprep.mubr.msk.f32.mxu0 %vm57_vm1, %v31_v7  ;;  %v41_v17 = vld [vmem:[%s2186_s0 + $0x70] sm:$0xff]  ;;  %v42_v18 = vld [vmem:[%s2186_s0 + $0x78] sm:$0xff]  ;;  %v43_v19 = vld [vmem:[%s2186_s0 + $0x80] sm:$0xff] }
   0xe   :  { %v44_v20 = vld [vmem:[%s2186_s0 + $0x88] sm:$0xff]  ;;  %v45_v21 = vld [vmem:[%s2186_s0 + $0x90] sm:$0xff]  ;;  %v46_v22 = vld [vmem:[%s2186_s0 + $0x98] sm:$0xff] }
   0xf   :  { %v310_v23 = vld [vmem:[%s2189_s3 + $0x18] sm:$0x3f]  ;;  %v309_v24 = vld [vmem:[%s2189_s3 + $0x10] sm:$0xff]  ;;  %v308_v25 = vld [vmem:[%s2189_s3 + $0x8] sm:$0xff] }
  0x10   :  { %1381 = vmatmul.mubr.msk.f32.gmra.mxu0 %vm57_vm1, %v32_v8  ;;  %1404 = vmatprep.subr.msk.mxu1 %vm379_vm2, %v310_v23  ;;  %v307_v26 = vld [vmem:[%s2189_s3] sm:$0xff] }
  0x11   :  { %1383 = vmatprep.mubr.msk.f32.mxu0 %vm57_vm1, %v33_v9  ;;  %1405 = vmatpush3.msk.msra.mxu1 %vm379_vm2, %v310_v23  ;;  %v1838_v27 = vld [vmem:[%s2188_s2] ss:$0 sm:$0xff] }
  0x12   :  { %1406 = vmatprep.subr.mxu1 %v309_v24 }
  0x13   :  { %1407 = vmatpush3.msra.mxu1 %v309_v24  ;;  %v548_v24 = vld [vmem:[%s2191_s5] sm:$0xff] }
  0x14   :  { %1384 = vmatmul.mubr.msk.f32.gmra.mxu0 %vm57_vm1, %v34_v10  ;;  %1408 = vmatprep.subr.mxu1 %v308_v25 }
  0x15   :  { %1386 = vmatprep.mubr.msk.f32.mxu0 %vm57_vm1, %v35_v11  ;;  %1409 = vmatpush3.msra.mxu1 %v308_v25  ;;  %v1690_v25 = vmov 0  }
  0x16   :  { %1410 = vmatprep.subr.mxu1 %v307_v26  ;;  %1547 = vset.pattern.permute.xlu1 %v1690_v25 }
  0x17   :  { %1411 = vmatpush3.msra.mxu1 %v307_v26  ;;  %1546 = vset.pattern.permute.xlu0 %v1690_v25  ;;  %v570_v26 = vld [vmem:[%s2192_s6 + $0x10] sm:$0xff]  ;;  %v555_v25 = vld [vmem:[%s2191_s5 + $0x38] sm:$0xff] }
  0x18   :  { %1387 = vmatmul.mubr.msk.f32.gmra.mxu0 %vm57_vm1, %v36_v12  ;;  %600 = vperm.xlu1 %1547, %v570_v26  }
  0x19   :  { %1389 = vmatprep.mubr.msk.f32.mxu0 %vm57_vm1, %v37_v13 }
  0x1c   :  { %1390 = vmatmul.mubr.msk.f32.gmra.mxu0 %vm57_vm1, %v38_v14 }
  0x1d   :  { %1392 = vmatprep.mubr.msk.f32.mxu0 %vm57_vm1, %v39_v15 }
  0x20   :  { %1393 = vmatmul.mubr.msk.f32.gmra.mxu0 %vm57_vm1, %v40_v16 }
  0x21   :  { %1395 = vmatprep.mubr.msk.f32.mxu0 %vm57_vm1, %v41_v17 }
  0x24   :  { %1396 = vmatmul.mubr.msk.f32.gmra.mxu0 %vm57_vm1, %v42_v18 }
  0x25   :  { %1398 = vmatprep.mubr.msk.f32.mxu0 %vm57_vm1, %v43_v19 }
  0x28   :  { %1399 = vmatmul.mubr.msk.f32.gmra.mxu0 %vm57_vm1, %v44_v20 }
  0x29   :  { %1401 = vmatprep.mubr.msk.f32.mxu0 %vm57_vm1, %v45_v21 }
  0x2c   :  { %1402 = vmatmul.mubr.msk.f32.gmra.mxu0 %vm57_vm1, %v46_v22 }
  0x2d   :  { %1462 = vmatprep.mubr.msk.f32.mxu0 %vm688_vm4, %v548_v24 }
  0xc8   :  { %v1376_v28 = vpop.f32.mrf.mxu0 }
  0xc9   :  { %v194_v29 = vadd.f32 %v1376_v28, %v1838_v27  ;;  %v571_v28 = vld [vmem:[%s2192_s6 + $0x18] sm:$0xff] }
  0xca   :  { %v188_v30 = vpop.f32.mrf.mxu0  ;;  %605 = vperm.xlu1 %1547, %v571_v28  }
  0xcb   :  { %v189_v31 = vadd.f32 %v1838_v27, %v188_v30  ;;  %v573_v30 = vld [vmem:[%s2192_s6 + $0x28] sm:$0xff] }
  0xcc   :  { %v1379_v32 = vpop.f32.mrf.mxu0 }
  0xcd   :  { %1548 = vtanh.f32 %v189_v31  ;;  %v204_v33 = vadd.f32 %v1379_v32, %v1838_v27  ;;  %v572_v31 = vld [vmem:[%s2192_s6 + $0x20] sm:$0xff]  ;;  %v575_v32 = vld [vmem:[%s2192_s6 + $0x38] sm:$0xff] }
  0xce   :  { %1550 = vtanh.f32 %v194_v29  ;;  %v198_v34 = vpop.f32.mrf.mxu0  ;;  %v569_v29 = vld [vmem:[%s2192_s6 + $0x8] sm:$0xff]  ;;  %615 = vperm.xlu1 %1547, %v573_v30  }
  0xcf   :  { %v199_v35 = vadd.f32 %v1838_v27, %v198_v34  ;;  %v577_v34 = vld [vmem:[%s2192_s6 + $0x48] sm:$0xff] }
  0xd0   :  { %v1382_v36 = vpop.f32.mrf.mxu0 }
  0xd1   :  { %1552 = vtanh.f32 %v199_v35  ;;  %v214_v37 = vadd.f32 %v1382_v36, %v1838_v27  ;;  %v576_v35 = vld [vmem:[%s2192_s6 + $0x40] sm:$0xff]  ;;  %v579_v36 = vld [vmem:[%s2192_s6 + $0x58] sm:$0xff] }
  0xd2   :  { %1554 = vtanh.f32 %v204_v33  ;;  %v208_v38 = vpop.f32.mrf.mxu0  ;;  %v574_v33 = vld [vmem:[%s2192_s6 + $0x30] sm:$0xff]  ;;  %625 = vperm.xlu1 %1547, %v575_v32  }
  0xd3   :  { %v209_v39 = vadd.f32 %v1838_v27, %v208_v38  ;;  %v581_v38 = vld [vmem:[%s2192_s6 + $0x68] sm:$0xff] }
  0xd4   :  { %v1385_v40 = vpop.f32.mrf.mxu0 }
  0xd5   :  { %1556 = vtanh.f32 %v209_v39  ;;  %v224_v41 = vadd.f32 %v1385_v40, %v1838_v27  ;;  %v580_v39 = vld [vmem:[%s2192_s6 + $0x60] sm:$0xff]  ;;  %v583_v40 = vld [vmem:[%s2192_s6 + $0x78] sm:$0xff] }
  0xd6   :  { %1558 = vtanh.f32 %v214_v37  ;;  %v218_v42 = vpop.f32.mrf.mxu0  ;;  %635 = vperm.xlu1 %1547, %v577_v34   ;;  %v578_v37 = vld [vmem:[%s2192_s6 + $0x50] sm:$0xff]  ;;  %v560_v34 = vld [vmem:[%s2191_s5 + $0x60] sm:$0xff] }
  0xd7   :  { %v219_v43 = vadd.f32 %v1838_v27, %v218_v42  ;;  %v585_v42 = vld [vmem:[%s2192_s6 + $0x88] sm:$0xff] }
  0xd8   :  { %v1388_v44 = vpop.f32.mrf.mxu0 }
  0xd9   :  { %1560 = vtanh.f32 %v219_v43  ;;  %v234_v46 = vadd.f32 %v1388_v44, %v1838_v27  ;;  %v584_v43 = vld [vmem:[%s2192_s6 + $0x80] sm:$0xff]  ;;  %v587_v44 = vld [vmem:[%s2192_s6 + $0x98] sm:$0xff] }
  0xda   :  { %v1549_v45 = vpop.eup %1548  ;;  %1562 = vtanh.f32 %v224_v41  ;;  %v228_v47 = vpop.f32.mrf.mxu0  ;;  %645 = vperm.xlu1 %1547, %v579_v36   ;;  %v582_v41 = vld [vmem:[%s2192_s6 + $0x70] sm:$0xff] }
  0xdb   :  { %v1551_v48 = vpop.eup %1550  ;;  %v229_v49 = vadd.f32 %v1838_v27, %v228_v47  ;;  %1412 = vmatprep.mubr.msk.f32.mxu1 %vm318_vm3, %v1549_v45  ;;  %v586_v45 = vld [vmem:[%s2192_s6 + $0x90] sm:$0xff] }
  0xdc   :  { %v1391_v50 = vpop.f32.mrf.mxu0  ;;  %1413 = vmatmul.mubr.msk.f32.vlgmr.msra.gmra.mxu1 %vm318_vm3, %v1551_v48  ;;  %v562_v36 = vld [vmem:[%s2191_s5 + $0x70] sm:$0xff] }
  0xdd   :  { %1564 = vtanh.f32 %v229_v49  ;;  %v244_v52 = vadd.f32 %v1391_v50, %v1838_v27 }
  0xde   :  { %v1553_v51 = vpop.eup %1552  ;;  %1566 = vtanh.f32 %v234_v46  ;;  %v238_v53 = vpop.f32.mrf.mxu0  ;;  %655 = vperm.xlu1 %1547, %v581_v38   ;;  %v564_v38 = vld [vmem:[%s2191_s5 + $0x80] sm:$0xff] }
  0xdf   :  { %v1555_v54 = vpop.eup %1554  ;;  %v239_v55 = vadd.f32 %v1838_v27, %v238_v53  ;;  %1415 = vmatprep.mubr.msk.f32.mxu1 %vm318_vm3, %v1553_v51 }
  0xe0   :  { %v1394_v56 = vpop.f32.mrf.mxu0  ;;  %1416 = vmatmul.mubr.msk.f32.gmra.mxu1 %vm318_vm3, %v1555_v54  ;;  %v1948_v54 = vld [vmem:[%s2190_s4] ss:$0 sm:$0xff] }
  0xe1   :  { %1568 = vtanh.f32 %v239_v55  ;;  %v254_v58 = vadd.f32 %v1394_v56, %v1838_v27 }
  0xe2   :  { %v1557_v57 = vpop.eup %1556  ;;  %1570 = vtanh.f32 %v244_v52  ;;  %v248_v59 = vpop.f32.mrf.mxu0  ;;  %665 = vperm.xlu1 %1547, %v583_v40   ;;  %v566_v40 = vld [vmem:[%s2191_s5 + $0x90] sm:$0xff] }
  0xe3   :  { %v1559_v60 = vpop.eup %1558  ;;  %v249_v61 = vadd.f32 %v1838_v27, %v248_v59  ;;  %1418 = vmatprep.mubr.msk.f32.mxu1 %vm318_vm3, %v1557_v57 }
  0xe4   :  { %v1397_v62 = vpop.f32.mrf.mxu0  ;;  %1419 = vmatmul.mubr.msk.f32.gmra.mxu1 %vm318_vm3, %v1559_v60 }
  0xe5   :  { %1572 = vtanh.f32 %v249_v61  ;;  %v264_v0 = vadd.f32 %v1397_v62, %v1838_v27 }
  0xe6   :  { %v1561_v63 = vpop.eup %1560  ;;  %1574 = vtanh.f32 %v254_v58  ;;  %v258_v1 = vpop.f32.mrf.mxu0  ;;  %675 = vperm.xlu1 %1547, %v585_v42  }
  0xe7   :  { %v1563_v2 = vpop.eup %1562  ;;  %v259_v3 = vadd.f32 %v1838_v27, %v258_v1  ;;  %1421 = vmatprep.mubr.msk.f32.mxu1 %vm318_vm3, %v1561_v63  ;;  %v2071_v42 = vpop.permute.xlu1 %600 }
  0xe8   :  { %v1400_v4 = vpop.f32.mrf.mxu0  ;;  %1422 = vmatmul.mubr.msk.f32.gmra.mxu1 %vm318_vm3, %v1563_v2 }
  0xe9   :  { %1576 = vtanh.f32 %v259_v3  ;;  %v274_v6 = vadd.f32 %v1400_v4, %v1838_v27 }
  0xea   :  { %v1565_v5 = vpop.eup %1564  ;;  %1578 = vtanh.f32 %v264_v0  ;;  %v268_v7 = vpop.f32.mrf.mxu0  ;;  %685 = vperm.xlu1 %1547, %v587_v44  }
  0xeb   :  { %v1567_v8 = vpop.eup %1566  ;;  %v269_v9 = vadd.f32 %v1838_v27, %v268_v7  ;;  %1424 = vmatprep.mubr.msk.f32.mxu1 %vm318_vm3, %v1565_v5 }
  0xec   :  { %v1403_v10 = vpop.f32.mrf.mxu0  ;;  %1425 = vmatmul.mubr.msk.f32.gmra.mxu1 %vm318_vm3, %v1567_v8 }
  0xed   :  { %1580 = vtanh.f32 %v269_v9  ;;  %v284_v12 = vadd.f32 %v1403_v10, %v1838_v27 }
  0xee   :  { %v1569_v11 = vpop.eup %1568  ;;  %1582 = vtanh.f32 %v274_v6  ;;  %v278_v13 = vpop.f32.mrf.mxu0 }
  0xef   :  { %v1571_v14 = vpop.eup %1570  ;;  %v279_v15 = vadd.f32 %v1838_v27, %v278_v13  ;;  %1427 = vmatprep.mubr.msk.f32.mxu1 %vm318_vm3, %v1569_v11  ;;  %v568_v27 = vld [vmem:[%s2192_s6] sm:$0xff] }
  0xf0   :  { %1428 = vmatmul.mubr.msk.f32.gmra.mxu1 %vm318_vm3, %v1571_v14  ;;  %590 = vperm.xlu0 %1546, %v568_v27   ;;  %v550_v14 = vld [vmem:[%s2191_s5 + $0x10] sm:$0xff]  ;;  %v556_v27 = vld [vmem:[%s2191_s5 + $0x40] sm:$0xff] }
  0xf1   :  { %1584 = vtanh.f32 %v279_v15 }
  0xf2   :  { %v1573_v16 = vpop.eup %1572  ;;  %1586 = vtanh.f32 %v284_v12  ;;  %v549_v12 = vld [vmem:[%s2191_s5 + $0x8] sm:$0xff] }
  0xf3   :  { %v1575_v17 = vpop.eup %1574  ;;  %1430 = vmatprep.mubr.msk.f32.mxu1 %vm318_vm3, %v1573_v16 }
  0xf4   :  { %1431 = vmatmul.mubr.msk.f32.gmra.mxu1 %vm318_vm3, %v1575_v17  ;;  %595 = vperm.xlu0 %1546, %v569_v29   ;;  %v551_v17 = vld [vmem:[%s2191_s5 + $0x18] sm:$0xff]  ;;  %v557_v29 = vld [vmem:[%s2191_s5 + $0x48] sm:$0xff] }
  0xf6   :  { %v1577_v18 = vpop.eup %1576 }
  0xf7   :  { %v1579_v19 = vpop.eup %1578  ;;  %1433 = vmatprep.mubr.msk.f32.mxu1 %vm318_vm3, %v1577_v18 }
  0xf8   :  { %1434 = vmatmul.mubr.msk.f32.gmra.mxu1 %vm318_vm3, %v1579_v19  ;;  %610 = vperm.xlu0 %1546, %v572_v31   ;;  %v552_v19 = vld [vmem:[%s2191_s5 + $0x20] sm:$0xff]  ;;  %v558_v31 = vld [vmem:[%s2191_s5 + $0x50] sm:$0xff] }
  0xfa   :  { %v1581_v20 = vpop.eup %1580 }
  0xfb   :  { %v1583_v21 = vpop.eup %1582  ;;  %1436 = vmatprep.mubr.msk.f32.mxu1 %vm318_vm3, %v1581_v20 }
  0xfc   :  { %1437 = vmatmul.mubr.msk.f32.gmra.mxu1 %vm318_vm3, %v1583_v21  ;;  %620 = vperm.xlu0 %1546, %v574_v33   ;;  %v553_v21 = vld [vmem:[%s2191_s5 + $0x28] sm:$0xff]  ;;  %v559_v33 = vld [vmem:[%s2191_s5 + $0x58] sm:$0xff] }
  0xfe   :  { %v1585_v22 = vpop.eup %1584 }
  0xff   :  { %v1587_v23 = vpop.eup %1586  ;;  %1439 = vmatprep.mubr.msk.f32.mxu1 %vm318_vm3, %v1585_v22 }
 0x100   :  { %1440 = vmatmul.mubr.msk.f32.gmra.mxu1 %vm318_vm3, %v1587_v23  ;;  %630 = vperm.xlu0 %1546, %v576_v35   ;;  %v554_v23 = vld [vmem:[%s2191_s5 + $0x30] sm:$0xff]  ;;  %v561_v35 = vld [vmem:[%s2191_s5 + $0x68] sm:$0xff] }
 0x101   :  { %1512 = vmatprep.mubr.msk.f32.mxu1 %vm688_vm4, %v548_v24 }
 0x104   :  { %640 = vperm.xlu0 %1546, %v578_v37   ;;  %v563_v37 = vld [vmem:[%s2191_s5 + $0x78] sm:$0xff] }
 0x108   :  { %650 = vperm.xlu0 %1546, %v580_v39   ;;  %v565_v39 = vld [vmem:[%s2191_s5 + $0x88] sm:$0xff] }
 0x10c   :  { %660 = vperm.xlu0 %1546, %v582_v41   ;;  %v567_v41 = vld [vmem:[%s2191_s5 + $0x98] sm:$0xff]  ;;  %s1691_s5 = smov [#allocation2]  }
 0x10d   :  { %s1166_s28 = sshll.u32 %s1691_s5, 4  ;;  %s1167_s28 = int_to_ptr.vmem [resolvable:$true] %s1166_s28 }
 0x10e   :  { %s1668_s29 = scalar_lea.vmem %s1167_s28, 5120  ;;  %p1673_p1 = scmp.lt.s32.totalorder %s1167_s28, %s1167_s28 }
 0x10f   :  { %p1669_p0 = scmp.ne.s32.totalorder %s1167_s28, %s1668_s29  ;;  %p1674_p2 = scmp.lt.s32.totalorder %s1668_s29, %s1668_s29 }
 0x110   :  { %670 = vperm.xlu0 %1546, %v584_v43  }
 0x111   :  { %p1675_p3 = por %p1674_p2, %p1673_p1 }
 0x113   :  { %p1676_p4 = pnand %p1675_p3, %p1669_p0 }
 0x114   :  { %680 = vperm.xlu0 %1546, %v586_v45  }
 0x145   :  { %v2073_v44 = vpop.permute.xlu1 %605 }
 0x16b   :  { %v591_v43 = vpop.permute.xlu0 %590 }
 0x16f   :  { %v596_v45 = vpop.permute.xlu0 %595 }
 0x19c   :  { %v1414_v46 = vpop.f32.mrf.mxu1 }
 0x19d   :  { %v455_v8 = vadd.f32 %v1414_v46, %v1948_v54  ;;  %v2075_v46 = vpop.permute.xlu1 %615 }
 0x19e   :  { %v449_v47 = vpop.f32.mrf.mxu1 }
 0x19f   :  { %v450_v10 = vadd.f32 %v1948_v54, %v449_v47  ;;  %v2077_v47 = vpop.permute.xlu0 %610 }
 0x1a0   :  { %v1417_v48 = vpop.f32.mrf.mxu1 }
 0x1a1   :  { %v465_v4 = vadd.f32 %v1417_v48, %v1948_v54  ;;  %v2079_v48 = vpop.permute.xlu1 %625 }
 0x1a2   :  { %v459_v49 = vpop.f32.mrf.mxu1 }
 0x1a3   :  { %v460_v6 = vadd.f32 %v1948_v54, %v459_v49 }
 0x1a4   :  { %v1420_v50 = vpop.f32.mrf.mxu1 }
 0x1a5   :  { %v475_v0 = vadd.f32 %v1420_v50, %v1948_v54 }
 0x1a6   :  { %v469_v51 = vpop.f32.mrf.mxu1 }
 0x1a7   :  { %v470_v2 = vadd.f32 %v1948_v54, %v469_v51  ;;  %v2081_v51 = vpop.permute.xlu0 %620 }
 0x1a8   :  { %v1423_v52 = vpop.f32.mrf.mxu1 }
 0x1a9   :  { %v485_v60 = vadd.f32 %v1423_v52, %v1948_v54 }
 0x1aa   :  { %v479_v53 = vpop.f32.mrf.mxu1 }
 0x1ab   :  { %v480_v62 = vadd.f32 %v1948_v54, %v479_v53 }
 0x1ac   :  { %v1426_v55 = vpop.f32.mrf.mxu1 }
 0x1ad   :  { %v495_v56 = vadd.f32 %v1426_v55, %v1948_v54 }
 0x1ae   :  { %v489_v57 = vpop.f32.mrf.mxu1 }
 0x1af   :  { %v490_v58 = vadd.f32 %v1948_v54, %v489_v57  ;;  %1442 = vmatprep.subr.mxu0 %v495_v56 }
 0x1b0   :  { %v1952_v59 = vpop.f32.mrf.mxu1  ;;  %1443 = vmatpush3.msra.mxu0 %v495_v56  ;;  %v2084_v56 = vpop.permute.xlu1 %635 }
 0x1b1   :  { %1444 = vmatprep.subr.mxu0 %v490_v58  ;;  %v505_v30 = vadd.f32 %v1952_v59, %v1948_v54  ;;  %v2087_v59 = vpop.permute.xlu0 %630 }
 0x1b2   :  { %v1955_v61 = vpop.f32.mrf.mxu1  ;;  %1445 = vmatpush3.msra.mxu0 %v490_v58 }
 0x1b3   :  { %1446 = vmatprep.subr.mxu0 %v485_v60  ;;  %v500_v32 = vadd.f32 %v1948_v54, %v1955_v61 }
 0x1b4   :  { %v1432_v63 = vpop.f32.mrf.mxu1  ;;  %1447 = vmatpush3.msra.mxu0 %v485_v60 }
 0x1b5   :  { %1448 = vmatprep.subr.mxu0 %v480_v62  ;;  %v515_v26 = vadd.f32 %v1432_v63, %v1948_v54 }
 0x1b6   :  { %v509_v1 = vpop.f32.mrf.mxu1  ;;  %1449 = vmatpush3.msra.mxu0 %v480_v62 }
 0x1b7   :  { %1450 = vmatprep.subr.mxu0 %v475_v0  ;;  %v510_v28 = vadd.f32 %v1948_v54, %v509_v1 }
 0x1b8   :  { %v1435_v3 = vpop.f32.mrf.mxu1  ;;  %1451 = vmatpush3.msra.mxu0 %v475_v0  ;;  %v2091_v0 = vpop.permute.xlu1 %645 }
 0x1b9   :  { %1452 = vmatprep.subr.mxu0 %v470_v2  ;;  %v525_v22 = vadd.f32 %v1435_v3, %v1948_v54  ;;  %v2094_v3 = vpop.permute.xlu0 %640 }
 0x1ba   :  { %v519_v5 = vpop.f32.mrf.mxu1  ;;  %1453 = vmatpush3.msra.mxu0 %v470_v2 }
 0x1bb   :  { %1454 = vmatprep.subr.mxu0 %v465_v4  ;;  %v520_v24 = vadd.f32 %v1948_v54, %v519_v5 }
 0x1bc   :  { %v1438_v7 = vpop.f32.mrf.mxu1  ;;  %1455 = vmatpush3.msra.mxu0 %v465_v4 }
 0x1bd   :  { %1456 = vmatprep.subr.mxu0 %v460_v6  ;;  %v535_v18 = vadd.f32 %v1438_v7, %v1948_v54 }
 0x1be   :  { %v529_v9 = vpop.f32.mrf.mxu1  ;;  %1457 = vmatpush3.msra.mxu0 %v460_v6 }
 0x1bf   :  { %1458 = vmatprep.subr.mxu0 %v455_v8  ;;  %v530_v20 = vadd.f32 %v1948_v54, %v529_v9  ;;  %v2099_v9 = vpop.permute.xlu1 %655 }
 0x1c0   :  { %v1441_v11 = vpop.f32.mrf.mxu1  ;;  %1459 = vmatpush3.msra.mxu0 %v455_v8 }
 0x1c1   :  { %v545_v13 = vadd.f32 %v1441_v11, %v1948_v54  ;;  %1460 = vmatprep.subr.mxu0 %v450_v10 }
 0x1c2   :  { %v539_v15 = vpop.f32.mrf.mxu1  ;;  %1461 = vmatpush3.msra.mxu0 %v450_v10 }
 0x1c3   :  { %v540_v16 = vadd.f32 %v1948_v54, %v539_v15  ;;  %1492 = vmatprep.subr.mxu1 %v545_v13  ;;  %1463 = vmatmul.mubr.msk.f32.vlgmr.msra.gmra.mxu0 %vm688_vm4, %v549_v12 }
 0x1c4   :  { %1493 = vmatpush3.msra.mxu1 %v545_v13  ;;  %1465 = vmatprep.mubr.msk.f32.mxu0 %vm688_vm4, %v550_v14  ;;  %v2103_v13 = vpop.permute.xlu0 %650 }
 0x1c5   :  { %1494 = vmatprep.subr.mxu1 %v540_v16 }
 0x1c6   :  { %1495 = vmatpush3.msra.mxu1 %v540_v16 }
 0x1c7   :  { %1496 = vmatprep.subr.mxu1 %v535_v18  ;;  %1466 = vmatmul.mubr.msk.f32.gmra.mxu0 %vm688_vm4, %v551_v17 }
 0x1c8   :  { %1497 = vmatpush3.msra.mxu1 %v535_v18  ;;  %1468 = vmatprep.mubr.msk.f32.mxu0 %vm688_vm4, %v552_v19 }
 0x1c9   :  { %1498 = vmatprep.subr.mxu1 %v530_v20 }
 0x1ca   :  { %1499 = vmatpush3.msra.mxu1 %v530_v20 }
 0x1cb   :  { %1500 = vmatprep.subr.mxu1 %v525_v22  ;;  %1469 = vmatmul.mubr.msk.f32.gmra.mxu0 %vm688_vm4, %v553_v21 }
 0x1cc   :  { %1501 = vmatpush3.msra.mxu1 %v525_v22  ;;  %1471 = vmatprep.mubr.msk.f32.mxu0 %vm688_vm4, %v554_v23 }
 0x1cd   :  { %1502 = vmatprep.subr.mxu1 %v520_v24 }
 0x1ce   :  { %1503 = vmatpush3.msra.mxu1 %v520_v24  ;;  %v2109_v24 = vpop.permute.xlu1 %665 }
 0x1cf   :  { %1504 = vmatprep.subr.mxu1 %v515_v26  ;;  %1472 = vmatmul.mubr.msk.f32.gmra.mxu0 %vm688_vm4, %v555_v25 }
 0x1d0   :  { %1505 = vmatpush3.msra.mxu1 %v515_v26  ;;  %1474 = vmatprep.mubr.msk.f32.mxu0 %vm688_vm4, %v556_v27 }
 0x1d1   :  { %1506 = vmatprep.subr.mxu1 %v510_v28 }
 0x1d2   :  { %1507 = vmatpush3.msra.mxu1 %v510_v28 }
 0x1d3   :  { %1508 = vmatprep.subr.mxu1 %v505_v30  ;;  %1475 = vmatmul.mubr.msk.f32.gmra.mxu0 %vm688_vm4, %v557_v29 }
 0x1d4   :  { %1509 = vmatpush3.msra.mxu1 %v505_v30  ;;  %1477 = vmatprep.mubr.msk.f32.mxu0 %vm688_vm4, %v558_v31  ;;  %v2114_v30 = vpop.permute.xlu0 %660 }
 0x1d5   :  { %1510 = vmatprep.subr.mxu1 %v500_v32 }
 0x1d6   :  { %1511 = vmatpush3.msra.mxu1 %v500_v32 }
 0x1d7   :  { %1513 = vmatmul.mubr.msk.f32.vlgmr.msra.gmra.mxu1 %vm688_vm4, %v549_v12  ;;  %1478 = vmatmul.mubr.msk.f32.gmra.mxu0 %vm688_vm4, %v559_v33 }
 0x1d8   :  { %1515 = vmatprep.mubr.msk.f32.mxu1 %vm688_vm4, %v550_v14  ;;  %1480 = vmatprep.mubr.msk.f32.mxu0 %vm688_vm4, %v560_v34 }
 0x1db   :  { %1516 = vmatmul.mubr.msk.f32.gmra.mxu1 %vm688_vm4, %v551_v17  ;;  %1481 = vmatmul.mubr.msk.f32.gmra.mxu0 %vm688_vm4, %v561_v35 }
 0x1dc   :  { %1518 = vmatprep.mubr.msk.f32.mxu1 %vm688_vm4, %v552_v19  ;;  %1483 = vmatprep.mubr.msk.f32.mxu0 %vm688_vm4, %v562_v36 }
 0x1df   :  { %1519 = vmatmul.mubr.msk.f32.gmra.mxu1 %vm688_vm4, %v553_v21  ;;  %1484 = vmatmul.mubr.msk.f32.gmra.mxu0 %vm688_vm4, %v563_v37 }
 0x1e0   :  { %1521 = vmatprep.mubr.msk.f32.mxu1 %vm688_vm4, %v554_v23  ;;  %1486 = vmatprep.mubr.msk.f32.mxu0 %vm688_vm4, %v564_v38 }
 0x1e3   :  { %1522 = vmatmul.mubr.msk.f32.gmra.mxu1 %vm688_vm4, %v555_v25  ;;  %1487 = vmatmul.mubr.msk.f32.gmra.mxu0 %vm688_vm4, %v565_v39 }
 0x1e4   :  { %1524 = vmatprep.mubr.msk.f32.mxu1 %vm688_vm4, %v556_v27  ;;  %1489 = vmatprep.mubr.msk.f32.mxu0 %vm688_vm4, %v566_v40 }
 0x1e7   :  { %1525 = vmatmul.mubr.msk.f32.gmra.mxu1 %vm688_vm4, %v557_v29  ;;  %1490 = vmatmul.mubr.msk.f32.gmra.mxu0 %vm688_vm4, %v567_v41 }
 0x1e8   :  { %1527 = vmatprep.mubr.msk.f32.mxu1 %vm688_vm4, %v558_v31 }
 0x1eb   :  { %1528 = vmatmul.mubr.msk.f32.gmra.mxu1 %vm688_vm4, %v559_v33 }
 0x1ec   :  { %1530 = vmatprep.mubr.msk.f32.mxu1 %vm688_vm4, %v560_v34 }
 0x1ef   :  { %1531 = vmatmul.mubr.msk.f32.gmra.mxu1 %vm688_vm4, %v561_v35 }
 0x1f0   :  { %1533 = vmatprep.mubr.msk.f32.mxu1 %vm688_vm4, %v562_v36 }
 0x1f3   :  { %1534 = vmatmul.mubr.msk.f32.gmra.mxu1 %vm688_vm4, %v563_v37 }
 0x1f4   :  { %1536 = vmatprep.mubr.msk.f32.mxu1 %vm688_vm4, %v564_v38 }
 0x1f7   :  { %1537 = vmatmul.mubr.msk.f32.gmra.mxu1 %vm688_vm4, %v565_v39 }
 0x1f8   :  { %1539 = vmatprep.mubr.msk.f32.mxu1 %vm688_vm4, %v566_v40 }
 0x1fb   :  { %1540 = vmatmul.mubr.msk.f32.gmra.mxu1 %vm688_vm4, %v567_v41  ;;  %v2122_v41 = vpop.permute.xlu1 %675 }
 0x283   :  { %v1464_v49 = vpop.f32.mrf.mxu0 }
 0x284   :  { %v821_v50 = vadd.f32 %v1464_v49, %v596_v45 }
 0x285   :  { %v815_v52 = vpop.f32.mrf.mxu0 }
 0x286   :  { %v816_v53 = vadd.f32 %v815_v52, %v591_v43  ;;  %1588 = vtanh.f32 %v821_v50  ;;  %v2127_v50 = vpop.permute.xlu0 %670 }
 0x287   :  { %v1467_v54 = vpop.f32.mrf.mxu0 }
 0x288   :  { %1590 = vtanh.f32 %v816_v53  ;;  %v831_v55 = vadd.f32 %v1467_v54, %v2073_v44 }
 0x289   :  { %v825_v57 = vpop.f32.mrf.mxu0 }
 0x28a   :  { %1592 = vtanh.f32 %v831_v55  ;;  %v826_v58 = vadd.f32 %v825_v57, %v2071_v42 }
 0x28b   :  { %v1470_v60 = vpop.f32.mrf.mxu0 }
 0x28c   :  { %1594 = vtanh.f32 %v826_v58  ;;  %v841_v61 = vadd.f32 %v1470_v60, %v2075_v46 }
 0x28d   :  { %v835_v62 = vpop.f32.mrf.mxu0 }
 0x28e   :  { %1596 = vtanh.f32 %v841_v61  ;;  %v836_v63 = vadd.f32 %v835_v62, %v2077_v47  ;;  %v2135_v62 = vpop.permute.xlu1 %685 }
 0x28f   :  { %v1473_v1 = vpop.f32.mrf.mxu0 }
 0x290   :  { %1598 = vtanh.f32 %v836_v63  ;;  %v851_v2 = vadd.f32 %v1473_v1, %v2079_v48 }
 0x291   :  { %v845_v4 = vpop.f32.mrf.mxu0 }
 0x292   :  { %1600 = vtanh.f32 %v851_v2  ;;  %v846_v5 = vadd.f32 %v845_v4, %v2081_v51 }
 0x293   :  { %v1589_v6 = vpop.eup %1588  ;;  %v1476_v7 = vpop.f32.mrf.mxu0 }
 0x294   :  { %936 = vst.msk [vmem:[#allocation2 + $0x8] sm:$0xff] %vm934_vm5, %v1589_v6  ;;  %1602 = vtanh.f32 %v846_v5  ;;  %v861_v8 = vadd.f32 %v1476_v7, %v2084_v56  ;;  %v2140_v6 = vpop.permute.xlu0 %680 }
 0x295   :  { %v1591_v10 = vpop.eup %1590  ;;  %v855_v11 = vpop.f32.mrf.mxu0 }
 0x296   :  { %935 = vst.msk [vmem:[#allocation2] sm:$0xff] %vm934_vm5, %v1591_v10  ;;  %1604 = vtanh.f32 %v861_v8  ;;  %v856_v12 = vadd.f32 %v855_v11, %v2087_v59 }
 0x297   :  { %v1593_v14 = vpop.eup %1592  ;;  %v1514_v15 = vpop.f32.mrf.mxu1 }
 0x298   :  { %v1479_v16 = vpop.f32.mrf.mxu0  ;;  %938 = vst.msk [vmem:[#allocation2 + $0x18] sm:$0xff] %vm934_vm5, %v1593_v14  ;;  %v1027_v17 = vadd.f32 %v1514_v15, %v596_v45  ;;  %1606 = vtanh.f32 %v856_v12 }
 0x299   :  { %v871_v18 = vadd.f32 %v1479_v16, %v2091_v0  ;;  %v1595_v19 = vpop.eup %1594  ;;  %v1021_v20 = vpop.f32.mrf.mxu1 }
 0x29a   :  { %v865_v21 = vpop.f32.mrf.mxu0  ;;  %937 = vst.msk [vmem:[#allocation2 + $0x10] sm:$0xff] %vm934_vm5, %v1595_v19  ;;  %1608 = vtanh.f32 %v1027_v17  ;;  %v1022_v22 = vadd.f32 %v1021_v20, %v591_v43 }
 0x29b   :  { %v866_v23 = vadd.f32 %v865_v21, %v2094_v3  ;;  %v1597_v25 = vpop.eup %1596  ;;  %v1517_v26 = vpop.f32.mrf.mxu1  ;;  %1610 = vtanh.f32 %v871_v18 }
 0x29c   :  { %v1482_v27 = vpop.f32.mrf.mxu0  ;;  %940 = vst.msk [vmem:[#allocation2 + $0x28] sm:$0xff] %vm934_vm5, %v1597_v25  ;;  %1612 = vtanh.f32 %v1022_v22  ;;  %v1037_v28 = vadd.f32 %v1517_v26, %v2073_v44 }
 0x29d   :  { %v881_v29 = vadd.f32 %v1482_v27, %v2099_v9  ;;  %v1599_v31 = vpop.eup %1598  ;;  %v1031_v32 = vpop.f32.mrf.mxu1  ;;  %1614 = vtanh.f32 %v866_v23 }
 0x29e   :  { %v875_v33 = vpop.f32.mrf.mxu0  ;;  %939 = vst.msk [vmem:[#allocation2 + $0x20] sm:$0xff] %vm934_vm5, %v1599_v31  ;;  %1616 = vtanh.f32 %v1037_v28  ;;  %v1032_v34 = vadd.f32 %v1031_v32, %v2071_v42 }
 0x29f   :  { %v876_v35 = vadd.f32 %v875_v33, %v2103_v13  ;;  %v1601_v36 = vpop.eup %1600  ;;  %v1520_v37 = vpop.f32.mrf.mxu1  ;;  %1618 = vtanh.f32 %v881_v29 }
 0x2a0   :  { %v1485_v38 = vpop.f32.mrf.mxu0  ;;  %942 = vst.msk [vmem:[#allocation2 + $0x38] sm:$0xff] %vm934_vm5, %v1601_v36  ;;  %1620 = vtanh.f32 %v1032_v34  ;;  %v1047_v39 = vadd.f32 %v1520_v37, %v2075_v46 }
 0x2a1   :  { %v891_v40 = vadd.f32 %v1485_v38, %v2109_v24  ;;  %v1603_v43 = vpop.eup %1602  ;;  %v1041_v44 = vpop.f32.mrf.mxu1  ;;  %1622 = vtanh.f32 %v876_v35 }
 0x2a2   :  { %v885_v45 = vpop.f32.mrf.mxu0  ;;  %941 = vst.msk [vmem:[#allocation2 + $0x30] sm:$0xff] %vm934_vm5, %v1603_v43  ;;  %1624 = vtanh.f32 %v1047_v39  ;;  %v1042_v42 = vadd.f32 %v1041_v44, %v2077_v47 }
 0x2a3   :  { %v886_v49 = vadd.f32 %v885_v45, %v2114_v30  ;;  %v1605_v52 = vpop.eup %1604  ;;  %v1523_v53 = vpop.f32.mrf.mxu1  ;;  %1626 = vtanh.f32 %v891_v40 }
 0x2a4   :  { %v1488_v46 = vpop.f32.mrf.mxu0  ;;  %944 = vst.msk [vmem:[#allocation2 + $0x48] sm:$0xff] %vm934_vm5, %v1605_v52  ;;  %1628 = vtanh.f32 %v1042_v42  ;;  %v1057_v54 = vadd.f32 %v1523_v53, %v2079_v48 }
 0x2a5   :  { %v901_v55 = vadd.f32 %v1488_v46, %v2122_v41  ;;  %v1607_v57 = vpop.eup %1606  ;;  %v1051_v58 = vpop.f32.mrf.mxu1  ;;  %1630 = vtanh.f32 %v886_v49 }
 0x2a6   :  { %v895_v60 = vpop.f32.mrf.mxu0  ;;  %943 = vst.msk [vmem:[#allocation2 + $0x40] sm:$0xff] %vm934_vm5, %v1607_v57  ;;  %1632 = vtanh.f32 %v1057_v54  ;;  %v1052_v47 = vadd.f32 %v1051_v58, %v2081_v51 }
 0x2a7   :  { %v896_v61 = vadd.f32 %v895_v60, %v2127_v50  ;;  %v1609_v63 = vpop.eup %1608  ;;  %v1526_v1 = vpop.f32.mrf.mxu1  ;;  %1634 = vtanh.f32 %v901_v55 }
 0x2a8   :  { %v1491_v2 = vpop.f32.mrf.mxu0  ;;  %v1611_v48 = vpop.eup %1610  ;;  %1142 = vst.msk [vmem:[#allocation2 + $0xa8] sm:$0xff] %vm934_vm5, %v1609_v63  ;;  %1636 = vtanh.f32 %v1052_v47  ;;  %v1067_v4 = vadd.f32 %v1526_v1, %v2084_v56 }
 0x2a9   :  { %v911_v5 = vadd.f32 %v1491_v2, %v2135_v62  ;;  %v1613_v7 = vpop.eup %1612  ;;  %946 = vst.msk [vmem:[#allocation2 + $0x58] sm:$0xff] %vm934_vm5, %v1611_v48  ;;  %v1061_v51 = vpop.f32.mrf.mxu1  ;;  %1638 = vtanh.f32 %v896_v61 }
 0x2aa   :  { %v905_v8 = vpop.f32.mrf.mxu0  ;;  %v1615_v10 = vpop.eup %1614  ;;  %1141 = vst.msk [vmem:[#allocation2 + $0xa0] sm:$0xff] %vm934_vm5, %v1613_v7  ;;  %1640 = vtanh.f32 %v1067_v4  ;;  %v1062_v11 = vadd.f32 %v1061_v51, %v2087_v59 }
 0x2ab   :  { %v906_v12 = vadd.f32 %v905_v8, %v2140_v6  ;;  %v1617_v14 = vpop.eup %1616  ;;  %945 = vst.msk [vmem:[#allocation2 + $0x50] sm:$0xff] %vm934_vm5, %v1615_v10  ;;  %v1529_v56 = vpop.f32.mrf.mxu1  ;;  %1642 = vtanh.f32 %v911_v5 }
 0x2ac   :  { %v1619_v15 = vpop.eup %1618  ;;  %1144 = vst.msk [vmem:[#allocation2 + $0xb8] sm:$0xff] %vm934_vm5, %v1617_v14  ;;  %1644 = vtanh.f32 %v1062_v11  ;;  %v1077_v16 = vadd.f32 %v1529_v56, %v2091_v0 }
 0x2ad   :  { %v1621_v17 = vpop.eup %1620  ;;  %948 = vst.msk [vmem:[#allocation2 + $0x68] sm:$0xff] %vm934_vm5, %v1619_v15  ;;  %v1071_v18 = vpop.f32.mrf.mxu1  ;;  %1646 = vtanh.f32 %v906_v12 }
 0x2ae   :  { %v1623_v19 = vpop.eup %1622  ;;  %1143 = vst.msk [vmem:[#allocation2 + $0xb0] sm:$0xff] %vm934_vm5, %v1621_v17  ;;  %1648 = vtanh.f32 %v1077_v16  ;;  %v1072_v59 = vadd.f32 %v1071_v18, %v2094_v3 }
 0x2af   :  { %v1625_v20 = vpop.eup %1624  ;;  %947 = vst.msk [vmem:[#allocation2 + $0x60] sm:$0xff] %vm934_vm5, %v1623_v19  ;;  %v1532_v21 = vpop.f32.mrf.mxu1 }
 0x2b0   :  { %v1627_v22 = vpop.eup %1626  ;;  %1146 = vst.msk [vmem:[#allocation2 + $0xc8] sm:$0xff] %vm934_vm5, %v1625_v20  ;;  %1650 = vtanh.f32 %v1072_v59  ;;  %v1087_v0 = vadd.f32 %v1532_v21, %v2099_v9 }
 0x2b1   :  { %v1629_v23 = vpop.eup %1628  ;;  %950 = vst.msk [vmem:[#allocation2 + $0x78] sm:$0xff] %vm934_vm5, %v1627_v22  ;;  %v1081_v25 = vpop.f32.mrf.mxu1 }
 0x2b2   :  { %v1631_v26 = vpop.eup %1630  ;;  %1145 = vst.msk [vmem:[#allocation2 + $0xc0] sm:$0xff] %vm934_vm5, %v1629_v23  ;;  %1652 = vtanh.f32 %v1087_v0  ;;  %v1082_v3 = vadd.f32 %v1081_v25, %v2103_v13 }
 0x2b3   :  { %v1633_v27 = vpop.eup %1632  ;;  %949 = vst.msk [vmem:[#allocation2 + $0x70] sm:$0xff] %vm934_vm5, %v1631_v26  ;;  %v1535_v28 = vpop.f32.mrf.mxu1 }
 0x2b4   :  { %v1635_v29 = vpop.eup %1634  ;;  %1148 = vst.msk [vmem:[#allocation2 + $0xd8] sm:$0xff] %vm934_vm5, %v1633_v27  ;;  %1654 = vtanh.f32 %v1082_v3  ;;  %v1097_v9 = vadd.f32 %v1535_v28, %v2109_v24 }
 0x2b5   :  { %v1637_v31 = vpop.eup %1636  ;;  %952 = vst.msk [vmem:[#allocation2 + $0x88] sm:$0xff] %vm934_vm5, %v1635_v29  ;;  %v1091_v32 = vpop.f32.mrf.mxu1 }
 0x2b6   :  { %v1639_v33 = vpop.eup %1638  ;;  %1147 = vst.msk [vmem:[#allocation2 + $0xd0] sm:$0xff] %vm934_vm5, %v1637_v31  ;;  %1656 = vtanh.f32 %v1097_v9  ;;  %v1092_v13 = vadd.f32 %v1091_v32, %v2114_v30 }
 0x2b7   :  { %v1641_v34 = vpop.eup %1640  ;;  %951 = vst.msk [vmem:[#allocation2 + $0x80] sm:$0xff] %vm934_vm5, %v1639_v33  ;;  %v1538_v35 = vpop.f32.mrf.mxu1 }
 0x2b8   :  { %v1643_v36 = vpop.eup %1642  ;;  %1150 = vst.msk [vmem:[#allocation2 + $0xe8] sm:$0xff] %vm934_vm5, %v1641_v34  ;;  %1658 = vtanh.f32 %v1092_v13  ;;  %v1107_v24 = vadd.f32 %v1538_v35, %v2122_v41 }
 0x2b9   :  { %v1645_v37 = vpop.eup %1644  ;;  %954 = vst.msk [vmem:[#allocation2 + $0x98] sm:$0xff] %vm934_vm5, %v1643_v36  ;;  %v1101_v38 = vpop.f32.mrf.mxu1 }
 0x2ba   :  { %v1647_v39 = vpop.eup %1646  ;;  %1149 = vst.msk [vmem:[#allocation2 + $0xe0] sm:$0xff] %vm934_vm5, %v1645_v37  ;;  %1660 = vtanh.f32 %v1107_v24  ;;  %v1102_v30 = vadd.f32 %v1101_v38, %v2127_v50 }
 0x2bb   :  { %v1649_v40 = vpop.eup %1648  ;;  %953 = vst.msk [vmem:[#allocation2 + $0x90] sm:$0xff] %vm934_vm5, %v1647_v39  ;;  %v1541_v43 = vpop.f32.mrf.mxu1 }
 0x2bc   :  { %1152 = vst.msk [vmem:[#allocation2 + $0xf8] sm:$0xff] %vm934_vm5, %v1649_v40  ;;  %1662 = vtanh.f32 %v1102_v30  ;;  %v1117_v44 = vadd.f32 %v1541_v43, %v2135_v62 }
 0x2bd   :  { %v1651_v41 = vpop.eup %1650  ;;  %v1111_v45 = vpop.f32.mrf.mxu1 }
 0x2be   :  { %1151 = vst.msk [vmem:[#allocation2 + $0xf0] sm:$0xff] %vm934_vm5, %v1651_v41  ;;  %1664 = vtanh.f32 %v1117_v44  ;;  %v1112_v42 = vadd.f32 %v1111_v45, %v2140_v6 }
 0x2bf   :  { %v1653_v49 = vpop.eup %1652 }
 0x2c0   :  { %1154 = vst.msk [vmem:[#allocation2 + $0x108] sm:$0xff] %vm934_vm5, %v1653_v49  ;;  %1666 = vtanh.f32 %v1112_v42 }
 0x2c1   :  { %v1655_v50 = vpop.eup %1654 }
 0x2c2   :  { %1153 = vst.msk [vmem:[#allocation2 + $0x100] sm:$0xff] %vm934_vm5, %v1655_v50 }
 0x2c3   :  { %v1657_v52 = vpop.eup %1656 }
 0x2c4   :  { %1156 = vst.msk [vmem:[#allocation2 + $0x118] sm:$0xff] %vm934_vm5, %v1657_v52 }
 0x2c5   :  { %v1659_v53 = vpop.eup %1658 }
 0x2c6   :  { %1155 = vst.msk [vmem:[#allocation2 + $0x110] sm:$0xff] %vm934_vm5, %v1659_v53 }
 0x2c7   :  { %v1661_v46 = vpop.eup %1660 }
 0x2c8   :  { %1158 = vst.msk [vmem:[#allocation2 + $0x128] sm:$0xff] %vm934_vm5, %v1661_v46 }
 0x2c9   :  { %v1663_v54 = vpop.eup %1662 }
 0x2ca   :  { %1157 = vst.msk [vmem:[#allocation2 + $0x120] sm:$0xff] %vm934_vm5, %v1663_v54 }
 0x2cb   :  { %v1665_v55 = vpop.eup %1664 }
 0x2cc   :  { %1160 = vst.msk [vmem:[#allocation2 + $0x138] sm:$0xff] %vm934_vm5, %v1665_v55 }
 0x2cd   :  { %v1667_v57 = vpop.eup %1666 }
 0x2ce   :  { %1159 = vst.msk [vmem:[#allocation2 + $0x130] sm:$0xff] %vm934_vm5, %v1667_v57 }
 0x2cf   :  { %1679 = shalt.err (!%p1676_p4)
}
 0x2d0   :  { %s1692_s30 = smov 128   ;;  %s1693_s2 = smov 8  }
 0x2d1   :  { %1172 = dma.vmem_to_hbm [thread:$0]  %s1167_s28, 5120, %s2193_s7, [#allocation3], %s1692_s30, %s1692_s30, %s1693_s2  }
 0x2d2   :  { %1688 = dma.done.wait [#allocation3], 5120  }
 0x2d3   :  { %1689 = vsyncadd [#allocation3], 4294962176 }
 0x2d4   :  { %1176 = vsyncpa [#allocation3], 1 }

</bundles_post_ra>
